<compile_context>
chip_gen: v5e
topology: v5e:2x2
jax: 0.10.0
libtpu: 0.0.40
codegen_flags: <defaults>
</compile_context>

<pallas_src>
import functools
import math

import jax
import jax.numpy as jnp
from jax.experimental import pallas as pl
from jax.experimental.pallas import tpu as pltpu


def _round_up(x, m):
    return ((x + m - 1) // m) * m


def _erf(x):
    # Abramowitz & Stegun 7.1.26 rational approximation (max abs err ~1.5e-7),
    # built only from ops guaranteed to lower in Mosaic (exp/abs/div/select).
    a1, a2, a3, a4, a5 = (0.254829592, -0.284496736, 1.421413741,
                          -1.453152027, 1.061405429)
    p = 0.3275911
    ax = jnp.abs(x)
    t = 1.0 / (1.0 + p * ax)
    poly = ((((a5 * t + a4) * t + a3) * t + a2) * t + a1) * t
    y = 1.0 - poly * jnp.exp(-ax * ax)
    return jnp.where(x >= 0.0, y, -y)


def _gelu(y, approximate):
    if approximate:
        # tanh form: one EUP tanh instead of exp + divide + ~10 VALU ops.
        c = 0.7978845608028654  # sqrt(2/pi)
        return 0.5 * y * (1.0 + jnp.tanh(c * (y + 0.044715 * y * y * y)))
    # torch.nn.GELU() default: 0.5 * y * (1 + erf(y / sqrt(2)))
    return 0.5 * y * (1.0 + _erf(y * 0.7071067811865476))


def _peak_fuser_kernel(x_ref, w_ref, b_ref, *rest, n_k, apply_dropout,
                       approximate_gelu):
    # x_ref:     (tm, tk)  input slab (compute dtype)
    # w_ref:     (tk, tn)  weight slab, already (d_model, hidden) = W^T
    # b_ref:     (1,  tn)  bias slab (f32)
    # scale_ref: (tm, tn)  optional dropout scale (0 or 1/(1-p)), f32
    # o_ref:     (tm, tn)  f32 output block; doubles as the K accumulator
    if apply_dropout:
        scale_ref, o_ref = rest
    else:
        (o_ref,) = rest

    part = jnp.dot(x_ref[...], w_ref[...], preferred_element_type=jnp.float32)

    def epilogue(y):
        y = _gelu(y + b_ref[...], approximate_gelu)
        if apply_dropout:
            y = y * scale_ref[...]
        return y

    if n_k == 1:
        # Single K step (the shipped config): no accumulator round-trip at all.
        o_ref[...] = epilogue(part)
    else:
        k = pl.program_id(2)  # used only in `when` *conditions* (lowering-safe)

        @pl.when(k == 0)
        def _init():
            o_ref[...] = part

        @pl.when(k != 0)
        def _accum():
            o_ref[...] = o_ref[...] + part

        @pl.when(k == n_k - 1)
        def _finalize():
            o_ref[...] = epilogue(o_ref[...])


def _pick_kn_tile(dim):
    """Tile + padded size for a lane-ish dimension (K or N)."""
    if dim < 128:
        return dim, dim                       # full-dim block: legal, no pad
    padded = _round_up(dim, 128)              # lane-dense stores/loads
    if padded <= 512:
        return padded, padded
    for t in (512, 384, 256, 128):
        if padded % t == 0:
            return t, padded
    return 128, _round_up(dim, 128)


def _pick_m_tile(m):
    """Tile + padded size for the row dimension, minimising pad waste."""
    if m <= 512:
        tm = _round_up(m, 8)
        return tm, tm
    best_tm, best_pad = 512, _round_up(m, 512)
    for t in (384, 256, 128):
        pad = _round_up(m, t)
        if pad < best_pad:
            best_tm, best_pad = t, pad
    return best_tm, best_pad


class PeakFuserPallas:
    """Pallas port of the PyTorch `peak_fuser` module (Linear -> GELU -> Dropout)."""

    def __init__(self, d_model, hidden, drop_prob=0.1, *, key=None,
                 compute_dtype=jnp.float32, approximate_gelu=False):
        self.d_model = d_model
        self.hidden = hidden
        self.drop_prob = float(drop_prob)
        self.compute_dtype = compute_dtype
        self.approximate_gelu = bool(approximate_gelu)

        if key is None:
            key = jax.random.PRNGKey(0)
        kw, kb = jax.random.split(key)
        bound = 1.0 / math.sqrt(d_model)
        # torch.nn.Linear init: W, b ~ U(-1/sqrt(in), 1/sqrt(in)).
        # Stored pre-transposed as (d_model, hidden) so the kernel computes x @ W^T.
        self.w = jax.random.uniform(kw, (d_model, hidden), jnp.float32, -bound, bound)
        self.b = jax.random.uniform(kb, (hidden,), jnp.float32, -bound, bound)

        # K / N tiling is shape-static -> pad & cast the weights exactly once.
        self.tk, self.K_pad = _pick_kn_tile(d_model)
        self.tn, self.N_pad = _pick_kn_tile(hidden)
        wp = self.w
        if (self.K_pad, self.N_pad) != self.w.shape:
            wp = jnp.pad(self.w, ((0, self.K_pad - d_model),
                                  (0, self.N_pad - hidden)))
        self.w_padded = wp.astype(compute_dtype)
        bp = self.b if self.N_pad == hidden else jnp.pad(self.b, (0, self.N_pad - hidden))
        self.b_padded = bp.reshape(1, self.N_pad).astype(jnp.float32)

    def __call__(self, x, *, training=False, rng=None):
        orig_lead = x.shape[:-1]
        assert x.shape[-1] == self.d_model, x.shape
        out_dtype = x.dtype
        x2d = x.reshape(-1, self.d_model).astype(self.compute_dtype)
        M = x2d.shape[0]

        tm, M_pad = _pick_m_tile(M)
        # v7x has 2 TensorCores: make sure the 'parallel' axes have >= 2 blocks
        # when the grid would otherwise collapse to a single block.
        if (M_pad // tm) * (self.N_pad // self.tn) == 1 and tm % 16 == 0:
            tm //= 2

        if M_pad != M or self.K_pad != self.d_model:
            x2d = jnp.pad(x2d, ((0, M_pad - M), (0, self.K_pad - self.d_model)))

        n_k = self.K_pad // self.tk
        grid = (M_pad // tm, self.N_pad // self.tn, n_k)

        apply_dropout = bool(training) and self.drop_prob > 0.0

        inputs = [x2d, self.w_padded, self.b_padded]
        in_specs = [
            pl.BlockSpec((tm, self.tk), lambda i, j, k: (i, k)),       # x
            pl.BlockSpec((self.tk, self.tn), lambda i, j, k: (k, j)),  # W^T
            pl.BlockSpec((1, self.tn), lambda i, j, k: (0, j)),        # bias
        ]
        if apply_dropout:
            if rng is None:
                rng = jax.random.PRNGKey(0)
            keep = jax.random.bernoulli(rng, 1.0 - self.drop_prob,
                                        (M_pad, self.N_pad))
            scale = keep.astype(jnp.float32) * (1.0 / (1.0 - self.drop_prob))
            inputs.append(scale)
            in_specs.append(pl.BlockSpec((tm, self.tn), lambda i, j, k: (i, j)))

        # Explicit VMEM budget: double-buffered input/output tiles + headroom.
        csize = jnp.dtype(self.compute_dtype).itemsize
        footprint = 2 * (tm * self.tk * csize + self.tk * self.tn * csize
                         + tm * self.tn * 4 + self.tn * 4)
        if apply_dropout:
            footprint += 2 * tm * self.tn * 4
        vmem_limit = int(min(64 * 1024 * 1024,
                             max(footprint + (4 << 20), 16 << 20)))

        kernel = functools.partial(
            _peak_fuser_kernel,
            n_k=n_k,
            apply_dropout=apply_dropout,
            approximate_gelu=self.approximate_gelu,
        )

        out = pl.pallas_call(
            kernel,
            out_shape=jax.ShapeDtypeStruct((M_pad, self.N_pad), jnp.float32),
            grid_spec=pltpu.PrefetchScalarGridSpec(
                num_scalar_prefetch=0,
                grid=grid,
                in_specs=in_specs,
                out_specs=pl.BlockSpec((tm, self.tn), lambda i, j, k: (i, j)),
            ),
            compiler_params=pltpu.CompilerParams(
                dimension_semantics=("parallel", "parallel", "arbitrary"),
                vmem_limit_bytes=vmem_limit,
            ),
        )(*inputs)

        out = out[:M, :self.hidden].astype(out_dtype)
        return out.reshape(orig_lead + (self.hidden,))


if __name__ == "__main__":
    # Module config implied by the forward: d_model=32, hidden=64, drop_prob=0.1.
    d_model, hidden = 32, 64
    batch, seq = 2, 8

    key = jax.random.PRNGKey(0)
    kx, kp, kd = jax.random.split(key, 3)
    x = jax.random.normal(kx, (batch, seq, d_model), dtype=jnp.float32)

    fuser = PeakFuserPallas(d_model, hidden, drop_prob=0.1, key=kp)

    # Eval mode (dropout == identity): compare against an exact pure-JAX reference.
    out = jax.block_until_ready(fuser(x, training=False))

    y_ref = x.reshape(-1, d_model) @ fuser.w + fuser.b
    ref = 0.5 * y_ref * (1.0 + jax.scipy.special.erf(y_ref / jnp.sqrt(2.0)))
    ref = ref.reshape(batch, seq, hidden)

    assert out.shape == (batch, seq, hidden), out.shape
    max_err = float(jnp.max(jnp.abs(out - ref)))
    assert max_err < 1e-4, max_err

    # Training mode: dropout mask drawn with jax.random, applied in-kernel.
    out_tr = jax.block_until_ready(fuser(x, training=True, rng=kd))
    assert out_tr.shape == (batch, seq, hidden), out_tr.shape
    assert bool(jnp.all(jnp.isfinite(out_tr)))
    zero_frac = float(jnp.mean((out_tr == 0.0).astype(jnp.float32)))
    assert 0.01 <= zero_frac <= 0.30, zero_frac  # ~drop_prob, loose bounds

    print("KERNEL_OK")
</pallas_src>

<mosaic_0001>
module attributes {stable_mosaic.version = 11 : i64} {
  func.func @_peak_fuser_kernel(%arg0: i32, %arg1: i32, %arg2: i32, %arg3: memref<8x32xf32, #tpu.memory_space<vmem>>, %arg4: memref<32x64xf32, #tpu.memory_space<vmem>>, %arg5: memref<1x64xf32, #tpu.memory_space<vmem>>, %arg6: memref<8x64xf32, #tpu.memory_space<vmem>>) attributes {dimension_semantics = [#tpu.dimension_semantics<parallel>, #tpu.dimension_semantics<parallel>, #tpu.dimension_semantics<arbitrary>], iteration_bounds = array<i64: 2, 1, 1>, scalar_prefetch = 0 : i64, scratch_operands = 0 : i64, tpu.core_type = #tpu.core_type<tc>, window_params = [{transform_indices = @transform_0, window_bounds = array<i64: 8, 32>}, {transform_indices = @transform_1, window_bounds = array<i64: 32, 64>}, {transform_indices = @transform_2, window_bounds = array<i64: 1, 64>}, {transform_indices = @transform_3, window_bounds = array<i64: 8, 64>}]} {
    %c0 = arith.constant 0 : index
    %c0_0 = arith.constant 0 : index
    %0 = vector.load %arg3[%c0, %c0_0] : memref<8x32xf32, #tpu.memory_space<vmem>>, vector<8x32xf32>
    %c0_1 = arith.constant 0 : index
    %c0_2 = arith.constant 0 : index
    %1 = vector.load %arg4[%c0_1, %c0_2] : memref<32x64xf32, #tpu.memory_space<vmem>>, vector<32x64xf32>
    %cst = arith.constant dense<0.000000e+00> : vector<8x64xf32>
    %2 = tpu.matmul %0, %1, %cst {dimension_numbers = #tpu.dot_dimension_numbers<[1], [0], [0], [1], [0, 0, 1, 1], [], []>} : vector<8x32xf32>, vector<32x64xf32>, vector<8x64xf32> -> vector<8x64xf32>
    %c0_3 = arith.constant 0 : index
    %c0_4 = arith.constant 0 : index
    %3 = vector.load %arg5[%c0_3, %c0_4] : memref<1x64xf32, #tpu.memory_space<vmem>>, vector<1x64xf32>
    %4 = vector.broadcast %3 : vector<1x64xf32> to vector<8x64xf32>
    %5 = arith.addf %2, %4 : vector<8x64xf32>
    %cst_5 = arith.constant 5.000000e-01 : f32
    %6 = vector.broadcast %cst_5 : f32 to vector<8x64xf32>
    %7 = arith.mulf %6, %5 : vector<8x64xf32>
    %cst_6 = arith.constant 0.707106769 : f32
    %8 = vector.broadcast %cst_6 : f32 to vector<8x64xf32>
    %9 = arith.mulf %5, %8 : vector<8x64xf32>
    %10 = math.absf %9 : vector<8x64xf32>
    %cst_7 = arith.constant 0.327591091 : f32
    %11 = vector.broadcast %cst_7 : f32 to vector<8x64xf32>
    %12 = arith.mulf %11, %10 : vector<8x64xf32>
    %cst_8 = arith.constant 1.000000e+00 : f32
    %13 = vector.broadcast %cst_8 : f32 to vector<8x64xf32>
    %14 = arith.addf %13, %12 : vector<8x64xf32>
    %cst_9 = arith.constant 1.000000e+00 : f32
    %15 = vector.broadcast %cst_9 : f32 to vector<8x64xf32>
    %16 = arith.divf %15, %14 : vector<8x64xf32>
    %cst_10 = arith.constant 1.06140542 : f32
    %17 = vector.broadcast %cst_10 : f32 to vector<8x64xf32>
    %18 = arith.mulf %17, %16 : vector<8x64xf32>
    %cst_11 = arith.constant -1.45315206 : f32
    %19 = vector.broadcast %cst_11 : f32 to vector<8x64xf32>
    %20 = arith.addf %18, %19 : vector<8x64xf32>
    %21 = arith.mulf %20, %16 : vector<8x64xf32>
    %cst_12 = arith.constant 1.42141378 : f32
    %22 = vector.broadcast %cst_12 : f32 to vector<8x64xf32>
    %23 = arith.addf %21, %22 : vector<8x64xf32>
    %24 = arith.mulf %23, %16 : vector<8x64xf32>
    %cst_13 = arith.constant -0.284496725 : f32
    %25 = vector.broadcast %cst_13 : f32 to vector<8x64xf32>
    %26 = arith.addf %24, %25 : vector<8x64xf32>
    %27 = arith.mulf %26, %16 : vector<8x64xf32>
    %cst_14 = arith.constant 0.254829586 : f32
    %28 = vector.broadcast %cst_14 : f32 to vector<8x64xf32>
    %29 = arith.addf %27, %28 : vector<8x64xf32>
    %30 = arith.mulf %29, %16 : vector<8x64xf32>
    %cst_15 = arith.constant 0.000000e+00 : f32
    %31 = vector.broadcast %cst_15 : f32 to vector<8x64xf32>
    %32 = arith.subf %31, %10 : vector<8x64xf32>
    %33 = arith.mulf %32, %10 : vector<8x64xf32>
    %34 = math.exp %33 : vector<8x64xf32>
    %35 = arith.mulf %30, %34 : vector<8x64xf32>
    %cst_16 = arith.constant 1.000000e+00 : f32
    %36 = vector.broadcast %cst_16 : f32 to vector<8x64xf32>
    %37 = arith.subf %36, %35 : vector<8x64xf32>
    %cst_17 = arith.constant 0.000000e+00 : f32
    %38 = vector.broadcast %cst_17 : f32 to vector<8x64xf32>
    %39 = arith.cmpf oge, %9, %38 : vector<8x64xf32>
    %cst_18 = arith.constant 0.000000e+00 : f32
    %40 = vector.broadcast %cst_18 : f32 to vector<8x64xf32>
    %41 = arith.subf %40, %37 : vector<8x64xf32>
    %42 = arith.select %39, %37, %41 : vector<8x64xi1>, vector<8x64xf32>
    %cst_19 = arith.constant 1.000000e+00 : f32
    %43 = vector.broadcast %cst_19 : f32 to vector<8x64xf32>
    %44 = arith.addf %43, %42 : vector<8x64xf32>
    %45 = arith.mulf %7, %44 : vector<8x64xf32>
    %c0_20 = arith.constant 0 : index
    %c0_21 = arith.constant 0 : index
    %46 = vector.load %arg6[%c0_20, %c0_21] : memref<8x64xf32, #tpu.memory_space<vmem>>, vector<8x64xf32>
    tpu.vector_store %arg6[%c0_20, %c0_21], %45 {strides = array<i32>} : memref<8x64xf32, #tpu.memory_space<vmem>>, vector<8x64xf32>,
    return
  }
  func.func @transform_0(%arg0: i32, %arg1: i32, %arg2: i32) -> (i32, i32) {
    %c0_i32 = arith.constant 0 : i32
    return %arg0, %arg2 : i32, i32
  }
  func.func @transform_1(%arg0: i32, %arg1: i32, %arg2: i32) -> (i32, i32) {
    %c0_i32 = arith.constant 0 : i32
    return %arg2, %arg1 : i32, i32
  }
  func.func @transform_2(%arg0: i32, %arg1: i32, %arg2: i32) -> (i32, i32) {
    %c0_i32 = arith.constant 0 : i32
    %c0_i32_0 = arith.constant 0 : i32
    return %c0_i32, %arg1 : i32, i32
  }
  func.func @transform_3(%arg0: i32, %arg1: i32, %arg2: i32) -> (i32, i32) {
    %c0_i32 = arith.constant 0 : i32
    return %arg0, %arg1 : i32, i32
  }
}

</mosaic_0001>

<bundles_post_ra>
// kernel: tpu_custom_call.1
= control target key start
LH: loop header
LB: loop body
LE: loop exit
PB: predicated region body
PF: predicated region fallthrough
CT: control target
= control target key end

     0   :  { %8 = vsyncpa [#allocation3], 0  ;;  %s874_s0 = inlined_call_operand.hbm [shape: f32[16,32], index: 0, kind: input, shape index: {}]   ;;  %s875_s1 = inlined_call_operand.hbm [shape: f32[32,64], index: 1, kind: input, shape index: {}]   ;;  %s876_s2 = inlined_call_operand.vmem [shape: f32[1,64], index: 2, kind: input, shape index: {}]   ;;  %s877_s3 = inlined_call_operand.hbm [shape: f32[16,64], index: 3, kind: output, shape index: {}]  }
   0x1   :  { %10 = vsyncpa [#allocation3 + $0x1], 0 }
   0x2   :  { %11 = vsyncpa [#allocation6], 0 }
   0x3   :  { %12 = vsyncpa [#allocation4], 0 }
   0x4   :  { %14 = vsyncpa [#allocation4 + $0x1], 0  ;;  %s724_s12 = smov 0   ;;  %s726_s13 = smov 0  }
   0x5   :  { %s728_s14 = smov 0   ;;  %s730_s15 = smov 0  }
   0x6   :  { %s732_s16 = smov 0   ;;  %s734_s17 = smov 0  }
   0x7 LB: > { %s456_s18 = sadd.s32 4294967295, %s699_s17   ;;  %p458_p0 = scmp.ge.s32.totalorder %s699_s17, 1  ;;  %s699_s17 = sphi %s734_s17, %s20_s17   ;;  %s695_s16 = sphi %s732_s16, %s888_s16   ;;  %s691_s15 = sphi %s730_s15, %s887_s15   ;;  %s687_s14 = sphi %s728_s14, %s886_s14   ;;  %s683_s13 = sphi %s726_s13, %s885_s13   ;;  %s679_s12 = sphi %s724_s12, %s884_s12  }
   0x8   : > { %p756_p1 = scmp.eq.s32.totalorder %s456_s18, 0  ;;  %p154_p2 = scmp.lt.s32.totalorder %s699_s17, 3 }
   0x9   : > { %s169_s22 = sshll.u32 %s875_s1, 4  ;;  %s701_s24 = smov [#allocation5]   ;;  %s170_s22 = int_to_ptr.hbm [resolvable:$true] %s169_s22 }
   0xa   : > { %p764_p3 = pnand %p458_p0, %p154_p2  ;;  %s171_s25 = sshll.u32 %s701_s24, 4  ;;  %s172_s25 = int_to_ptr.vmem [resolvable:$true] %s171_s25 }
   0xb   : > { %p461_p6 = scmp.ge.s32.totalorder %s699_s17, 2  ;;  %s702_s26 = smov 128  }
   0xc   : > { %p481_p4 = pneg %p764_p3  ;;  %s703_s27 = smov 8  }
   0xd   : > { %s457_s28 = sadd.s32 4294967294, %s699_s17   ;;  %s39_s29 = sadd.s32 1, %s695_s16 }
   0xe   : > { %p482_p5 = pnand %p481_p4, %p756_p1  ;;  %s48_s30 = sadd.s32 1, %s687_s14 }
   0xf   : > { %p41_p7 = scmp.ge.s32.totalorder %s39_s29, 2  ;;  %p55_p8 = scmp.ne.s32.totalorder %s687_s14, %s683_s13 }
  0x10   : > { %484 = dma.hbm_to_vmem [thread:$0]  (!%p482_p5), %s170_s22, 512, %s172_s25, [#allocation6], %s702_s26, %s702_s26, %s703_s27  }
  0x11   : > { %p56_p9 = scmp.eq.s32.totalorder %s699_s17, 0  ;;  %p61_p10 = scmp.ne.s32.totalorder %s683_s13, %s679_s12 }
  0x12   : > { %s890_s29 = smov (%p41_p7, %s39_s29), 0  ;;  %p141_p13 = scmp.eq.s32.totalorder %s456_s18, 1 }
  0x13   : > { %p783_p11 = por %p56_p9, %p55_p8  ;;  %p789_p12 = por %p756_p1, %p61_p10 }
  0x14   : > { %s43_s6 = ssub.s32 %s695_s16, %s890_s29  ;;  %p147_p2 = scmp.eq.s32.totalorder %s457_s28, 1 }
  0x15   : > { %p46_p0 = scmp.eq.s32.totalorder %s43_s6, 0  ;;  %p795_p4 = por %p141_p13, %p55_p8 }
  0x16   : > { %p494_p5 = scmp.lt.s32.totalorder %s699_s17, 2  ;;  %p803_p7 = por %p147_p2, %p61_p10 }
  0x17   : > { %s801_s8 = scalar_select %p46_p0, %s687_s14, %s48_s30  }
  0x18   : > { %s191_s10 = sand.u32 1, %s687_s14   ;;  %s463_s20 = sshll.u32 %s695_s16, 3 }
  0x19   : > { %s462_s11 = sshll.u32 %s191_s10, 3  ;;  %s200_s18 = scalar_lea.hbm %s874_s0, %s463_s20 }
  0x1a   : > { %s195_s24 = scalar_lea.vmem [#allocation2], %s462_s11  ;;  %s202_s26 = sshll.u32 %s200_s18, 4  ;;  %s203_s26 = int_to_ptr.hbm [resolvable:$true] %s202_s26 }
  0x1b   : > { %s204_s25 = sshll.u32 %s195_s24, 4  ;;  %p486_p8 = pnand %p494_p5, %p783_p11  ;;  %s205_s25 = int_to_ptr.vmem [resolvable:$true] %s204_s25 }
  0x1c   : > { %s192_s27 = scalar_lea.sflag [#allocation3], %s191_s10  ;;  %213 = sbr.rel (%p764_p3) target bundleno = 229 (0xe5), region = 32 }
  0x1d   : > { %488 = dma.hbm_to_vmem [thread:$0]  (!%p486_p8), %s203_s26, 128, %s205_s25, %s192_s27  }
  0x1e   : > { %s817_s28 = sand.u32 (!%p764_p3), 1, %s683_s13  }
  0x1f   : > { %s465_s30 = sshll.u32 (!%p764_p3), %s817_s28, 3  ;;  %s216_s6 = scalar_lea.sflag (!%p764_p3), [#allocation3], %s817_s28 }
  0x20   : > { %s219_s11 = scalar_lea.vmem (!%p764_p3), [#allocation2], %s465_s30 }
  0x21   : > { %666 = dma.done.wait (%p789_p12), %s216_s6, 128  }
  0x22   : > { %668 = vsyncadd (%p789_p12), %s216_s6, 4294967168 }
  0x23   : > { %670 = dma.done.wait (%p756_p1), [#allocation6], 512  }
  0x24   : > { %672 = vsyncadd (%p756_p1), [#allocation6], 4294966784  ;;  %v259_v0 = vld [vmem:[#allocation5 + $0x18] sm:$0xff]  ;;  %v258_v1 = vld [vmem:[#allocation5 + $0x10] sm:$0xff]  ;;  %vm264_vm0 = vcmask 261120   ;;  %s470_s19 = sshll.u32 %s691_s15, 3 }
  0x25   : > { %280 = vmatpush.msra.mxu0 %v259_v0  ;;  %v257_v2 = vld [vmem:[#allocation5 + $0x8] sm:$0xff]  ;;  %v256_v3 = vld [vmem:[#allocation5] sm:$0xff]  ;;  %v255_v4 = vld [vmem:[%s219_s11] sm:$0xff]  ;;  %s342_s20 = scalar_lea.hbm %s877_s3, %s470_s19  ;;  %s250_s21 = scalar_lea.vmem [#allocation7], %s465_s30  ;;  %vm328_vm6 = vcmask 523264  }
  0x26   : > { %v548_v5 = vld [vmem:[%s876_s2] ss:$0 sm:$0xff]  ;;  %s344_s22 = sshll.u32 %s250_s21, 4  ;;  %s346_s18 = sshll.u32 %s342_s20, 4  ;;  %s345_s22 = int_to_ptr.vmem [resolvable:$true] %s344_s22  ;;  %s347_s18 = int_to_ptr.hbm [resolvable:$true] %s346_s18 }
  0x27   : > { %281 = vmatpush.msra.mxu0 %v258_v1  ;;  %s331_s15 = scalar_lea.sflag [#allocation4], %s817_s28  ;;  %s627_s24 = sshra.s32 %s347_s18, 4  ;;  %s628_s24 = int_to_ptr.hbm [resolvable:$true] %s627_s24 }
  0x28   : > { %s629_s25 = scalar_lea.hbm %s628_s24, 8  ;;  %s633_s30 = scalar_lea.hbm %s877_s3, 16 }
  0x29   : > { %282 = vmatpush.msra.mxu0 %v257_v2  ;;  %p630_p1 = scmp.ne.s32.totalorder %s628_s24, %s629_s25  ;;  %p634_p10 = scmp.lt.s32.totalorder %s628_s24, %s877_s3 }
  0x2a   : > { %p635_p11 = scmp.lt.s32.totalorder %s633_s30, %s629_s25 }
  0x2b   : > { %283 = vmatpush.msra.mxu0 %v256_v3  ;;  %p631_p3 = pnand %p630_p1, %p795_p4 }
  0x2c   : > { %468 = vmatmul.msk.f32.vlgmr.msra.gmra.mxu0 %vm264_vm0, %v255_v4  ;;  %p636_p12 = por %p635_p11, %p634_p10 }
  0x2d   : > { %p632_p9 = pneg %p631_p3 }
  0x2f   : > { %p637_p13 = pnand %p636_p12, %p632_p9 }
  0xa9   : > { %v285_v6 = vpop.f32.mrf.mxu0 }
  0xaa   : > { %v286_v7 = vadd.f32 %v548_v5, %v285_v6 }
  0xac   : > { %v289_v8 = vmul.f32 0.70710677, %v286_v7  ;;  %v288_v39 = vmul.f32 0.5, %v286_v7 }
  0xae   : > { %v290_v9 = vand.u32 2147483647, %v289_v8  ;;  %vm323_vm5 = vcmp.ge.f32.partialorder %v289_v8, 0.0 }
  0xb0   : > { %v291_v10 = vmul.f32 0.3275911, %v290_v9  ;;  %v317_v22 = vsub.f32 0.0, %v290_v9 }
  0xb2   : > { %v292_v11 = vadd.f32 1.0, %v291_v10  ;;  %v318_v25 = vmul.f32 %v317_v22, %v290_v9 }
  0xb4   : > { %549 = vrcp.f32 %v292_v11  ;;  %v304_v15 = vand.u32 2147483648, %v292_v11  ;;  %v302_v17 = vand.u32 2147483647, %v292_v11  ;;  %vm298_vm2 = vweird.f32 %v292_v11 }
  0xb5   : > { %v319_v28 = vmul.f32 1.442695, %v318_v25 }
  0xb6   : > { %v305_v19 = vor.u32 1.1754944e-38, %v304_v15  ;;  %vm303_vm4 = vcmp.eq.f32.partialorder %v302_v17, 8.507059e+37 }
  0xb7   : > { %551 = vpow2.f32 %v319_v28 }
  0xba   : > { %v550_v12 = vpop.eup %549 }
  0xbb   : > { %v294_v13 = vmul.f32 %v550_v12, %v292_v11  ;;  %vm299_vm1 = vweird.f32 %v550_v12 }
  0xbc   : > { %vm300_vm3 = vmor %vm298_vm2, %vm299_vm1 }
  0xbd   : > { %v295_v14 = vsub.f32 1.0, %v294_v13  ;;  %v552_v34 = vpop.eup %551 }
  0xbf   : > { %v296_v16 = vmul.f32 %v550_v12, %v295_v14 }
  0xc1   : > { %v297_v18 = vadd.f32 %v550_v12, %v296_v16 }
  0xc3   : > { %v301_v20 = vsel %vm300_vm3, %v550_v12, %v297_v18 }
  0xc4   : > { %v306_v21 = vsel %vm303_vm4, %v305_v19, %v301_v20 }
  0xc5   : > { %v308_v23 = vmul.f32 1.0614054, %v306_v21 }
  0xc7   : > { %v309_v24 = vadd.f32 -1.4531521, %v308_v23 }
  0xc9   : > { %v310_v26 = vmul.f32 %v309_v24, %v306_v21 }
  0xcb   : > { %v311_v27 = vadd.f32 1.4214138, %v310_v26 }
  0xcd   : > { %v312_v29 = vmul.f32 %v311_v27, %v306_v21 }
  0xcf   : > { %v313_v30 = vadd.f32 -0.28449672, %v312_v29 }
  0xd1   : > { %v314_v31 = vmul.f32 %v313_v30, %v306_v21 }
  0xd3   : > { %v315_v32 = vadd.f32 0.2548296, %v314_v31 }
  0xd5   : > { %v316_v33 = vmul.f32 %v315_v32, %v306_v21 }
  0xd7   : > { %v321_v35 = vmul.f32 %v552_v34, %v316_v33 }
  0xd9   : > { %v322_v36 = vsub.f32 1.0, %v321_v35 }
  0xdb   : > { %v324_v37 = vsub.f32 0.0, %v322_v36 }
  0xdd   : > { %v325_v38 = vsel %vm323_vm5, %v322_v36, %v324_v37 }
  0xde   : > { %v326_v40 = vadd.f32 1.0, %v325_v38 }
  0xe0   : > { %v327_v41 = vmul.f32 %v326_v40, %v288_v39 }
  0xe2   : > { %329 = vst.msk [vmem:[%s250_s21] sm:$0xff] %vm328_vm6, %v327_v41 }
  0xe3   : > { %640 = shalt.err (!%p637_p13)
}
  0xe4   : > { %479 = dma.vmem_to_hbm [thread:$0]  (%p795_p4), %s345_s22, 128, %s347_s18, %s331_s15  }
  0xe5 PF: > { %s358_s28 = sand.u32 1, %s679_s12   ;;  %p490_p0 = pnand %p461_p6, %p803_p7 }
  0xe6   : > { %s359_s23 = scalar_lea.sflag [#allocation4], %s358_s28 }
  0xe7   : > { %p491_p2 = pneg %p490_p0 }
  0xe9   : > { %674 = dma.done.wait (%p491_p2), %s359_s23, 128  }
  0xea   : > { %676 = vsyncadd (%p491_p2), %s359_s23, 4294967168  ;;  %s20_s17 = sadd.s32 1, %s699_s17   ;;  %s884_s12 = smov %s683_s13 }
  0xeb   : > { %p17_p5 = scmp.ge.s32.totalorder %s20_s17, 4   ;;  %s885_s13 = smov %s687_s14 }
  0xec   : > { %s886_s14 = smov %s801_s8  ;;  %s887_s15 = smov %s695_s16 }
  0xed   : > { %s888_s16 = smov %s890_s29  ;;  %19 = sbr.rel (!%p17_p5) target bundleno = 7 (0x7), region = 85 }
  0xf2   :  { %365 = vsyncpa [#allocation3], 1 }
  0xf3   :  { %367 = vsyncpa [#allocation3 + $0x1], 1 }
  0xf4   :  { %368 = vsyncpa [#allocation6], 1 }
  0xf5   :  { %369 = vsyncpa [#allocation4], 1 }
  0xf6   :  { %371 = vsyncpa [#allocation4 + $0x1], 1 }

</bundles_post_ra>
